<compile_context>
chip_gen: v5e
topology: v5e:2x2
jax: 0.10.0
libtpu: 0.0.40
codegen_flags: <defaults>
</compile_context>

<pallas_src>
import jax
import jax.numpy as jnp
from jax.experimental import pallas as pl
from jax.experimental.pallas import tpu as pltpu


def _alias_touch_kernel(x_ref, o_ref):
    # Re-write one tiny tile of the aliased output with its own (identical)
    # data.  The rest of the output buffer is never touched and therefore
    # already holds the flattened input (output aliases input).
    o_ref[...] = x_ref[...]


def _flatten_impl(x: jax.Array) -> jax.Array:
    n = x.shape[0]
    flat = 1
    for d in x.shape[1:]:
        flat *= d

    # The actual flatten: a zero-cost metadata (bitcast) reshape.
    x2d = jnp.reshape(x, (n, flat))

    # Tiny lane-aligned block: dtype-aware sublane count (8 / 16 / 32 rows for
    # 4- / 2- / 1-byte dtypes) x 128 lanes, clamped to full dims when smaller.
    itemsize = jnp.dtype(x.dtype).itemsize
    min_sub = max(8, 32 // max(itemsize, 1))
    tile_r = n if n < min_sub else min_sub
    tile_c = flat if flat < 128 else 128

    return pl.pallas_call(
        _alias_touch_kernel,
        out_shape=jax.ShapeDtypeStruct((n, flat), x.dtype),
        grid=(1,),
        in_specs=[pl.BlockSpec((tile_r, tile_c), lambda i: (0, 0))],
        out_specs=pl.BlockSpec((tile_r, tile_c), lambda i: (0, 0)),
        input_output_aliases={0: 0},  # output buffer == (flattened) input buffer
        compiler_params=pltpu.CompilerParams(
            dimension_semantics=("arbitrary",),
        ),
    )(x2d)


# Zero-copy path: caller donates x; its HBM buffer is reused as the output.
flatten = jax.jit(_flatten_impl, donate_argnums=(0,))
# Non-donating variant (XLA inserts one defensive copy; still bit-exact).
flatten_no_donate = jax.jit(_flatten_impl)


if __name__ == "__main__":
    key = jax.random.PRNGKey(0)
    x = jax.random.normal(key, (2, 4, 16, 16), dtype=jnp.float32)

    batch = x.shape[0]
    flat = x.shape[1] * x.shape[2] * x.shape[3]

    # Reference computed (and materialized) BEFORE donating x.
    ref = jnp.reshape(x, (batch, -1))
    jax.block_until_ready(ref)

    out = flatten(x)  # donates x's buffer; x must not be used afterwards
    jax.block_until_ready(out)

    assert out.shape == (batch, flat)
    assert out.dtype == ref.dtype
    assert bool(jnp.array_equal(out, ref))

    print("KERNEL_OK")
</pallas_src>

<mosaic_0001>
module attributes {stable_mosaic.version = 11 : i64} {
  func.func @_alias_touch_kernel(%arg0: i32, %arg1: memref<2x128xf32, #tpu.memory_space<vmem>>, %arg2: memref<2x128xf32, #tpu.memory_space<vmem>>) attributes {dimension_semantics = [#tpu.dimension_semantics<arbitrary>], iteration_bounds = array<i64: 1>, scalar_prefetch = 0 : i64, scratch_operands = 0 : i64, tpu.core_type = #tpu.core_type<tc>, window_params = [{transform_indices = @transform_0, window_bounds = array<i64: 2, 128>}, {transform_indices = @transform_1, window_bounds = array<i64: 2, 128>}]} {
    %c0 = arith.constant 0 : index
    %c0_0 = arith.constant 0 : index
    %0 = vector.load %arg1[%c0, %c0_0] : memref<2x128xf32, #tpu.memory_space<vmem>>, vector<2x128xf32>
    %c0_1 = arith.constant 0 : index
    %c0_2 = arith.constant 0 : index
    %1 = vector.load %arg2[%c0_1, %c0_2] : memref<2x128xf32, #tpu.memory_space<vmem>>, vector<2x128xf32>
    tpu.vector_store %arg2[%c0_1, %c0_2], %0 {strides = array<i32>} : memref<2x128xf32, #tpu.memory_space<vmem>>, vector<2x128xf32>,
    return
  }
  func.func @transform_0(%arg0: i32) -> (i32, i32) {
    %c0_i32 = arith.constant 0 : i32
    %c0_i32_0 = arith.constant 0 : i32
    %c0_i32_1 = arith.constant 0 : i32
    return %c0_i32, %c0_i32_0 : i32, i32
  }
  func.func @transform_1(%arg0: i32) -> (i32, i32) {
    %c0_i32 = arith.constant 0 : i32
    %c0_i32_0 = arith.constant 0 : i32
    %c0_i32_1 = arith.constant 0 : i32
    return %c0_i32, %c0_i32_0 : i32, i32
  }
}

</mosaic_0001>

<bundles_post_ra>
// kernel: _flatten_impl.1
= control target key start
LH: loop header
LB: loop body
LE: loop exit
PB: predicated region body
PF: predicated region fallthrough
CT: control target
= control target key end

     0   :  { %6 = vsyncpa [#allocation3], 0  ;;  %s114_s0 = inlined_call_operand.hbm [shape: f32[2,1024], index: 0, kind: input, shape index: {}, may-alias: {0,1}]   ;;  %s115_s1 = inlined_call_operand.hbm [shape: f32[2,1024], index: 1, kind: output, shape index: {}, may-alias: {0,1}]  }
   0x1   :  { %7 = vsyncpa [#allocation4], 0  ;;  %s13_s8 = sshll.u32 %s114_s0, 4  ;;  %s96_s9 = smov [#allocation2]   ;;  %s14_s8 = int_to_ptr.hbm [resolvable:$true] %s13_s8 }
   0x2   :  { %s15_s10 = sshll.u32 %s96_s9, 4  ;;  %s16_s10 = int_to_ptr.vmem [resolvable:$true] %s15_s10 }
   0x3   :  { %18 = dma.hbm_to_vmem [thread:$0]  %s14_s8, 32, %s16_s10, [#allocation3]  }
   0x4   :  { %92 = dma.done.wait [#allocation3], 32  }
   0x5   :  { %93 = vsyncadd [#allocation3], 4294967264  ;;  %s97_s11 = smov [#allocation5]   ;;  %s32_s15 = sshll.u32 %s115_s1, 4  ;;  %v23_v0 = vld [vmem:[#allocation2] sm:$0x3]  ;;  %s33_s15 = int_to_ptr.hbm [resolvable:$true] %s32_s15 }
   0x6   :  { %s30_s12 = sshll.u32 %s97_s11, 4  ;;  %24 = vst [vmem:[#allocation5] sm:$0x3] %v23_v0  ;;  %s31_s12 = int_to_ptr.vmem [resolvable:$true] %s30_s12 }
   0x7   :  { %35 = dma.vmem_to_hbm [thread:$0]  %s31_s12, 32, %s33_s15, [#allocation4]  }
   0x8   :  { %94 = dma.done.wait [#allocation4], 32  }
   0x9   :  { %95 = vsyncadd [#allocation4], 4294967264 }
   0xa   :  { %40 = vsyncpa [#allocation3], 1 }
   0xb   :  { %41 = vsyncpa [#allocation4], 1 }

</bundles_post_ra>
